<compile_context>
chip_gen: v7x
topology: tpu7x:2x2x1
jax: 0.10.0
libtpu: 0.0.40
codegen_flags: <defaults>
</compile_context>

<pallas_src>
import functools

import jax
import jax.numpy as jnp
from jax.experimental import pallas as pl
from jax.experimental.pallas import tpu as pltpu


def _round_up(a, b):
    return -(-a // b) * b


def _rmsnorm_affine_kernel(x_ref, w_ref, o_ref, *, eps, inv_d,
                           cast_to_weight_dtype, weight_dtype):
    # x_ref block: (block_rows, D), lane-dense (D is the full last dim).
    # Per-row mean of squares in f32 (matches x.float().pow(2).mean(-1)).
    xf = x_ref[...].astype(jnp.float32)
    ms = jnp.sum(xf * xf, axis=-1, keepdims=True) * inv_d         # (TM, 1)
    scale = jax.lax.rsqrt(ms + eps)                               # EUP
    # Re-read the resident VMEM block instead of keeping the full f32 copy
    # live across the cross-lane reduction (frees VMEM scratch; v7x-friendly).
    y = x_ref[...].astype(jnp.float32) * scale                    # (TM, D) f32
    if cast_to_weight_dtype:
        # PyTorch: if weight is fp16/bf16, cast normalized x to weight dtype.
        y = y.astype(weight_dtype)
    o_ref[...] = (y * w_ref[...]).astype(o_ref.dtype)


def _rmsnorm_plain_kernel(x_ref, o_ref, *, eps, inv_d):
    # elementwise_affine=False path: no weight operand at all.
    xf = x_ref[...].astype(jnp.float32)
    ms = jnp.sum(xf * xf, axis=-1, keepdims=True) * inv_d
    scale = jax.lax.rsqrt(ms + eps)
    o_ref[...] = (x_ref[...].astype(jnp.float32) * scale).astype(o_ref.dtype)


def rmsnorm_forward(x, weight, *, eps, target_block_bytes=2 << 20):
    """RMSNorm over the last dim of `x` with optional elementwise-affine weight.

    x:      (..., D)
    weight: (D,) or None
    """
    *lead, D = x.shape
    M = 1
    for s in lead:
        M *= s
    x2 = x.reshape(M, D)

    x_itemsize = x.dtype.itemsize

    # --- output dtype: mirror the PyTorch promotion rules -------------------
    if weight is not None:
        weight_dtype = weight.dtype
        cast_to_weight_dtype = weight_dtype in (jnp.bfloat16, jnp.float16)
        if cast_to_weight_dtype:
            out_dtype = weight_dtype
        else:
            # x * rsqrt(var_f32) promotes to f32; f32-ish weight keeps it there.
            out_dtype = jnp.promote_types(x.dtype, jnp.float32)
        w2 = weight.reshape(1, D)
    else:
        weight_dtype = None
        cast_to_weight_dtype = False
        out_dtype = x.dtype
        w2 = None

    out_itemsize = jnp.zeros((), out_dtype).dtype.itemsize

    # --- byte-targeted row tile ---------------------------------------------
    # Sublane multiple matching the packed vreg tile of the narrowest dtype.
    min_item = min(x_itemsize, out_itemsize)
    sub = {4: 8, 2: 16, 1: 32}.get(min_item, 8)

    row_bytes = max(1, D * x_itemsize)
    rows = max(sub, (target_block_bytes // row_bytes) // sub * sub)
    rows = min(rows, _round_up(M, sub))
    # Prefer >= 2 grid steps when the data allows (v7x has two TensorCores).
    if rows >= M and M > sub:
        rows = _round_up(-(-M // 2), sub)

    # --- VMEM budget: double-buffered in/out blocks + f32 temps + weight ----
    def _vmem_need(r):
        x_blk = r * D * x_itemsize
        o_blk = r * D * out_itemsize
        w_b = 2 * D * weight_dtype.itemsize if weight is not None else 0
        f32_tmp = 2 * r * D * 4
        return 2 * (x_blk + o_blk) + w_b + f32_tmp + (2 << 20)

    while _vmem_need(rows) > (40 << 20) and rows > sub:
        rows = max(sub, (rows // 2) // sub * sub)
    vmem_limit = int(min(max(_vmem_need(rows), 16 << 20), 48 << 20))

    # --- pallas_call ---------------------------------------------------------
    grid = (pl.cdiv(M, rows),)  # partial last block handled by Pallas.
    x_spec = pl.BlockSpec((rows, D), lambda i: (i, 0))
    o_spec = pl.BlockSpec((rows, D), lambda i: (i, 0))

    if weight is not None:
        kernel = functools.partial(
            _rmsnorm_affine_kernel, eps=float(eps), inv_d=1.0 / D,
            cast_to_weight_dtype=cast_to_weight_dtype, weight_dtype=weight_dtype)
        in_specs = [x_spec, pl.BlockSpec((1, D), lambda i: (0, 0))]
        operands = (x2, w2)
    else:
        kernel = functools.partial(
            _rmsnorm_plain_kernel, eps=float(eps), inv_d=1.0 / D)
        in_specs = [x_spec]
        operands = (x2,)

    out = pl.pallas_call(
        kernel,
        out_shape=jax.ShapeDtypeStruct((M, D), out_dtype),
        grid_spec=pltpu.PrefetchScalarGridSpec(
            num_scalar_prefetch=0,
            grid=grid,
            in_specs=in_specs,
            out_specs=o_spec,
        ),
        compiler_params=pltpu.CompilerParams(
            dimension_semantics=("parallel",),
            vmem_limit_bytes=vmem_limit),
    )(*operands)

    return out.reshape(*lead, D)


def rmsnorm_reference(x, weight, *, eps):
    """Pure-JAX mirror of the PyTorch RMSNorm forward."""
    xf = x.astype(jnp.float32)
    var = jnp.mean(xf * xf, axis=-1, keepdims=True)
    y = xf * jax.lax.rsqrt(var + eps)
    if weight is not None:
        if weight.dtype in (jnp.bfloat16, jnp.float16):
            y = y.astype(weight.dtype)
        y = y * weight
    else:
        y = y.astype(x.dtype)
    return y


if __name__ == "__main__":
    # Small shapes consistent with the module: tokens (B, N, D) normalized
    # over D. D is a multiple of 128 so the kernel is lane-dense.
    B, N, D = 2, 64, 256
    eps = 1e-6

    key = jax.random.PRNGKey(0)
    kx, kw = jax.random.split(key)
    x = jax.random.normal(kx, (B, N, D), dtype=jnp.float32)
    weight = 1.0 + 0.1 * jax.random.normal(kw, (D,), dtype=jnp.float32)

    # f32 input + f32 weight.
    out = jax.block_until_ready(rmsnorm_forward(x, weight, eps=eps))
    ref = rmsnorm_reference(x, weight, eps=eps)
    assert out.shape == x.shape
    assert out.dtype == ref.dtype
    assert jnp.allclose(out, ref, atol=1e-5, rtol=1e-5), "f32 mismatch vs reference"

    # bf16 input + bf16 weight (variance in f32, output in bf16).
    x_bf = x.astype(jnp.bfloat16)
    w_bf = weight.astype(jnp.bfloat16)
    out_bf = jax.block_until_ready(rmsnorm_forward(x_bf, w_bf, eps=eps))
    ref_bf = rmsnorm_reference(x_bf, w_bf, eps=eps)
    assert out_bf.dtype == jnp.bfloat16
    assert jnp.allclose(out_bf.astype(jnp.float32), ref_bf.astype(jnp.float32),
                        atol=5e-2, rtol=5e-2), "bf16 mismatch vs reference"

    # elementwise_affine=False path (specialized kernel, no weight operand).
    out_nw = jax.block_until_ready(rmsnorm_forward(x, None, eps=eps))
    ref_nw = rmsnorm_reference(x, None, eps=eps)
    assert out_nw.dtype == x.dtype
    assert jnp.allclose(out_nw, ref_nw, atol=1e-5, rtol=1e-5), "no-weight mismatch"

    # Row count that does NOT divide the tile: exercises the partial last
    # block (no wrapper padding copy, no final slice).
    x_odd = jax.random.normal(kx, (3, 50, D), dtype=jnp.float32)
    out_odd = jax.block_until_ready(rmsnorm_forward(x_odd, weight, eps=eps))
    ref_odd = rmsnorm_reference(x_odd, weight, eps=eps)
    assert jnp.allclose(out_odd, ref_odd, atol=1e-5, rtol=1e-5), "partial-block mismatch"

    print("KERNEL_OK")
</pallas_src>

<mosaic_0001>
module attributes {stable_mosaic.version = 11 : i64} {
  func.func @_rmsnorm_affine_kernel(%arg0: i32, %arg1: memref<64x256xf32, #tpu.memory_space<vmem>>, %arg2: memref<1x256xf32, #tpu.memory_space<vmem>>, %arg3: memref<64x256xf32, #tpu.memory_space<vmem>>) attributes {dimension_semantics = [#tpu.dimension_semantics<parallel>], iteration_bounds = array<i64: 2>, scalar_prefetch = 0 : i64, scratch_operands = 0 : i64, tpu.core_type = #tpu.core_type<tc>, window_params = [{transform_indices = @transform_0, window_bounds = array<i64: 64, 256>}, {pipeline_mode = #tpu.pipeline_mode<synchronous>, transform_indices = @transform_1, window_bounds = array<i64: 1, 256>}, {transform_indices = @transform_2, window_bounds = array<i64: 64, 256>}]} {
    %c0 = arith.constant 0 : index
    %c0_0 = arith.constant 0 : index
    %0 = vector.load %arg1[%c0, %c0_0] : memref<64x256xf32, #tpu.memory_space<vmem>>, vector<64x256xf32>
    %1 = arith.mulf %0, %0 : vector<64x256xf32>
    %cst = arith.constant dense<0.000000e+00> : vector<64xf32>
    %2 = vector.multi_reduction <add>, %1, %cst [1] : vector<64x256xf32> to vector<64xf32>
    %3 = vector.shape_cast %2 : vector<64xf32> to vector<64x1xf32>
    %cst_1 = arith.constant 3.906250e-03 : f32
    %4 = vector.broadcast %cst_1 : f32 to vector<64x1xf32>
    %5 = arith.mulf %3, %4 : vector<64x1xf32>
    %cst_2 = arith.constant 9.99999997E-7 : f32
    %6 = vector.broadcast %cst_2 : f32 to vector<64x1xf32>
    %7 = arith.addf %5, %6 : vector<64x1xf32>
    %8 = math.rsqrt %7 : vector<64x1xf32>
    %c0_3 = arith.constant 0 : index
    %c0_4 = arith.constant 0 : index
    %9 = vector.load %arg1[%c0_3, %c0_4] : memref<64x256xf32, #tpu.memory_space<vmem>>, vector<64x256xf32>
    %10 = vector.broadcast %8 : vector<64x1xf32> to vector<64x256xf32>
    %11 = arith.mulf %9, %10 : vector<64x256xf32>
    %c0_5 = arith.constant 0 : index
    %c0_6 = arith.constant 0 : index
    %12 = vector.load %arg2[%c0_5, %c0_6] : memref<1x256xf32, #tpu.memory_space<vmem>>, vector<1x256xf32>
    %13 = vector.broadcast %12 : vector<1x256xf32> to vector<64x256xf32>
    %14 = arith.mulf %11, %13 : vector<64x256xf32>
    %c0_7 = arith.constant 0 : index
    %c0_8 = arith.constant 0 : index
    %15 = vector.load %arg3[%c0_7, %c0_8] : memref<64x256xf32, #tpu.memory_space<vmem>>, vector<64x256xf32>
    tpu.vector_store %arg3[%c0_7, %c0_8], %14 {strides = array<i32>} : memref<64x256xf32, #tpu.memory_space<vmem>>, vector<64x256xf32>,
    return
  }
  func.func @transform_0(%arg0: i32) -> (i32, i32) {
    %c0_i32 = arith.constant 0 : i32
    %c0_i32_0 = arith.constant 0 : i32
    return %arg0, %c0_i32 : i32, i32
  }
  func.func @transform_1(%arg0: i32) -> (i32, i32) {
    %c0_i32 = arith.constant 0 : i32
    %c0_i32_0 = arith.constant 0 : i32
    %c0_i32_1 = arith.constant 0 : i32
    return %c0_i32, %c0_i32_0 : i32, i32
  }
  func.func @transform_2(%arg0: i32) -> (i32, i32) {
    %c0_i32 = arith.constant 0 : i32
    %c0_i32_0 = arith.constant 0 : i32
    return %arg0, %c0_i32 : i32, i32
  }
}

</mosaic_0001>

<bundles_post_ra>
// kernel: tpu_custom_call.1
= control target key start
LH: loop header
LB: loop body
LE: loop exit
PB: predicated region body
PF: predicated region fallthrough
CT: control target
= control target key end

     0   :  { %7 = vsyncpa [#allocation3], 0  ;;  %s904_s0 = inlined_call_operand.hbm [shape: f32[128,256], index: 0, kind: input, shape index: {}]   ;;  %s905_s1 = inlined_call_operand.vmem [shape: f32[1,256], index: 1, kind: input, shape index: {}]   ;;  %s906_s2 = inlined_call_operand.hbm [shape: f32[128,256], index: 2, kind: output, shape index: {}]  }
   0x1   :  { %9 = vsyncpa [#allocation3 + $0x1], 0 }
   0x2   :  { %10 = vsyncpa [#allocation4], 0 }
   0x3   :  { %12 = vsyncpa [#allocation4 + $0x1], 0  ;;  %s598_s9 = smov 0   ;;  %s600_s10 = smov 0  }
   0x4   :  { %s602_s11 = smov 0   ;;  %s604_s12 = smov 0  }
   0x5 LB: > { %s619_s13 = sadd.s32 4294967295, %s575_s12   ;;  %s393_s14 = sadd.s32 4294967294, %s575_s12   ;;  %s575_s12 = sphi %s604_s12, %s919_s12   ;;  %s571_s11 = sphi %s602_s11, %s918_s11   ;;  %s567_s10 = sphi %s600_s10, %s917_s10   ;;  %s563_s9 = sphi %s598_s9, %s916_s9  }
   0x6   : > { %s623_s15 = sadd.s32 1, %s575_s12   ;;  %s25_s16 = sadd.s32 1, %s571_s11 }
   0x7   : > { %s22_s17 = ssub.s32 %s575_s12, %s623_s15  ;;  %p32_p0 = scmp.ne.s32.totalorder %s571_s11, %s567_s10 }
   0x8   : > { %p23_p1 = scmp.eq.s32.totalorder %s22_s17, 0  ;;  %p33_p2 = scmp.eq.s32.totalorder %s575_s12, 0 }
   0x9   : > { %p38_p3 = scmp.ne.s32.totalorder %s567_s10, %s563_s9  ;;  %p39_p4 = scmp.eq.s32.totalorder %s619_s13, 0 }
   0xa   : > { %s635_s18 = scalar_select %p23_p1, %s571_s11, %s25_s16  }
   0xb   : > { %p637_p5 = por %p33_p2, %p32_p0  ;;  %p641_p6 = por %p39_p4, %p38_p3 }
   0xc   : > { %p83_p7 = scmp.eq.s32.totalorder %s619_s13, 1  ;;  %p89_p8 = scmp.eq.s32.totalorder %s393_s14, 1 }
   0xd   : > { %p425_p10 = scmp.lt.s32.totalorder %s575_s12, 2  ;;  %s112_s23 = sand.u32 1, %s571_s11  }
   0xe   : > { %p648_p11 = por %p83_p7, %p32_p0  ;;  %p652_p12 = por %p89_p8, %p38_p3 }
   0xf   : > { %s410_s24 = sshll.u32 %s575_s12, 11  ;;  %s396_s25 = sshll.u32 %s112_s23, 7 }
  0x10   : > { %s910_s21 = scalar_select %p648_p11, 1, 0 }
  0x11   : > { %s911_s22 = scalar_select %p652_p12, 1, 0 }
  0x12   : > { %s661_s28 = scalar_lea.hbm %s904_s0, %s410_s24  ;;  %s116_s29 = scalar_lea.vmem [#allocation2], %s396_s25 }
  0x13   : > { %s124_s30 = sshll.u32 %s116_s29, 4  ;;  %p665_p13 = pnand %p425_p10, %p637_p5  ;;  %s669_s30 = int_to_ptr.vmem [resolvable:$true] %s124_s30 }
  0x14   : > { %s671_s4 = scalar_lea.sflag [#allocation3], %s112_s23  ;;  %s479_s5 = scalar_lea.hbm %s661_s28, 2048 }
  0x15   : > { %p480_p0 = scmp.ne.s32.totalorder %s661_s28, %s479_s5  ;;  %p481_p1 = pneg %p665_p13 }
  0x16   : > { %s484_s8 = scalar_lea.hbm %s904_s0, 4096  ;;  %p485_p4 = scmp.lt.u32.totalorder %s661_s28, %s904_s0 }
  0x17   : > { %p482_p2 = pnand %p481_p1, %p480_p0  ;;  %p486_p5 = scmp.lt.u32.totalorder %s484_s8, %s479_s5 }
  0x18   : > { %p488_p8 = scmp.lt.u32.totalorder %s479_s5, %s661_s28 }
  0x19   : > { %p483_p3 = pneg %p482_p2  ;;  %p487_p7 = por %p486_p5, %p485_p4 }
  0x1b   : > { %p489_p10 = por %p488_p8, %p487_p7 }
  0x1d   : > { %p490_p9 = pnand %p489_p10, %p483_p3 }
  0x1f   : > { %493 = shalt.err (!%p490_p9)
}
  0x20   : > { %s494_s17 = scalar_lea.vmem %s669_s30, 2048  ;;  %s577_s19 = smov [#allocation2]  }
  0x21   : > { %p495_p0 = scmp.ne.s32.totalorder %s669_s30, %s494_s17  ;;  %s499_s23 = sshll.u32 %s577_s19, 4  ;;  %s500_s23 = int_to_ptr.vmem [resolvable:$false] %s499_s23 }
  0x22   : > { %s501_s24 = scalar_lea.vmem %s500_s23, 4096  ;;  %p502_p11 = scmp.lt.s32.totalorder %s669_s30, %s500_s23 }
  0x23   : > { %p497_p2 = pnand %p495_p0, %p481_p1  ;;  %p503_p4 = scmp.lt.s32.totalorder %s501_s24, %s494_s17 }
  0x25   : > { %p498_p12 = pneg %p497_p2  ;;  %p504_p5 = por %p503_p4, %p502_p11 }
  0x27   : > { %p505_p7 = pnand %p504_p5, %p498_p12 }
  0x29   : > { %508 = shalt.err (!%p505_p7)
}
  0x2a   : > { %s578_s25 = smov 256   ;;  %s579_s26 = smov 16  }
  0x2b   : > { %420 = dma.hbm_to_vmem [thread:$0]  (!%p665_p13), %s661_s28, 2048, %s669_s30, %s671_s4, %s578_s25, %s578_s25, %s579_s26  }
  0x2c   : > { %p400_p9 = scmp.ge.s32.totalorder %s575_s12, 1  ;;  %p132_p1 = scmp.lt.s32.totalorder %s575_s12, 3 }
  0x2e   : > { %p133_p3 = pnand %p400_p9, %p132_p1 }
  0x2f   : > { %s702_s27 = sand.u32 (!%p133_p3), 1, %s567_s10  }
  0x30   : > { %136 = sbr.rel (%p133_p3) target bundleno = 250 (0xfa), region = 28  ;;  %s401_s29 = sshll.u32 (!%p133_p3), %s702_s27, 7 }
  0x31   : > { %s139_s5 = scalar_lea.sflag (!%p133_p3), [#allocation3], %s702_s27  ;;  %s708_s6 = scalar_lea.vmem (!%p133_p3), [#allocation2], %s401_s29 }
  0x37   : > { %554 = dma.done.wait (%p641_p6), %s139_s5, 2048  }
  0x38   : > { %556 = vsyncadd (%p641_p6), %s139_s5, 4294965248  ;;  %v715_v0 = vld [vmem:[%s708_s6 + $0x20] sm:$0xff]  ;;  %v718_v1 = vld [vmem:[%s708_s6 + $0x28] sm:$0xff]  ;;  %v263_v43 = vlaneseq  ;;  %s811_s30 = scalar_lea.vmem [#allocation5], %s401_s29  ;;  %s412_s3 = sshll.u32 %s619_s13, 11 }
  0x39   : > { %v721_v2 = vld [vmem:[%s708_s6] sm:$0xff]  ;;  %v185_v3 = vmul.f32 %v715_v0, %v715_v0  ;;  %v186_v4 = vmul.f32 %v718_v1, %v718_v1  ;;  %v728_v5 = vld [vmem:[%s708_s6 + $0x8] sm:$0xff]  ;;  %v733_v7 = vld [vmem:[%s708_s6 + $0x30] sm:$0xff]  ;;  %s320_s4 = sshll.u32 %s811_s30, 4  ;;  %s852_s8 = scalar_lea.hbm %s906_s2, %s412_s3  ;;  %s854_s4 = int_to_ptr.vmem [resolvable:$true] %s320_s4 }
  0x3a   : > { %v181_v6 = vmul.f32 %v721_v2, %v721_v2  ;;  %v736_v8 = vld [vmem:[%s708_s6 + $0x38] sm:$0xff]  ;;  %v182_v9 = vmul.f32 %v728_v5, %v728_v5  ;;  %v187_v10 = vmul.f32 %v733_v7, %v733_v7  ;;  %v745_v12 = vld [vmem:[%s708_s6 + $0x10] sm:$0xff]  ;;  %v761_v19 = vld [vmem:[%s708_s6 + $0x40] sm:$0xff]  ;;  %v264_v50 = vshrl.u32 %v263_v43, 7  ;;  %s306_s14 = scalar_lea.sflag [#allocation4], %s702_s27  ;;  %s509_s16 = scalar_lea.vmem %s854_s4, 2048 }
  0x3b   : > { %v188_v11 = vmul.f32 %v736_v8, %v736_v8  ;;  %v748_v13 = vld [vmem:[%s708_s6 + $0x18] sm:$0xff]  ;;  %v751_v14 = vld [vmem:[%s708_s6 + $0x50] sm:$0xff]  ;;  %v203_v15 = vadd.f32 %v186_v4, %v185_v3  ;;  %v183_v16 = vmul.f32 %v745_v12, %v745_v12  ;;  %v764_v20 = vld [vmem:[%s708_s6 + $0x48] sm:$0xff]  ;;  %v189_v26 = vmul.f32 %v761_v19, %v761_v19  ;;  %p510_p6 = scmp.ne.s32.totalorder %s854_s4, %s509_s16  ;;  %p913_p11 = scmp.ne.s32.totalorder %s910_s21, 0 }
  0x3c   : > { %v184_v17 = vmul.f32 %v748_v13, %v748_v13  ;;  %v758_v18 = vld [vmem:[%s708_s6 + $0x58] sm:$0xff]  ;;  %v197_v21 = vadd.f32 %v182_v9, %v181_v6  ;;  %v191_v23 = vmul.f32 %v751_v14, %v751_v14  ;;  %v190_v27 = vmul.f32 %v764_v20, %v764_v20  ;;  %v775_v28 = vld [vmem:[%s708_s6 + $0x70] sm:$0xff]  ;;  %v781_v30 = vld [vmem:[%s708_s6 + $0x60] sm:$0xff]  ;;  %s580_s17 = smov [#allocation5]  }
  0x3d   : > { %204 = vadd.xlane.f32.xlu1 %v203_v15  ;;  %v206_v22 = vadd.f32 %v188_v11, %v187_v10  ;;  %v192_v24 = vmul.f32 %v758_v18, %v758_v18  ;;  %v778_v29 = vld [vmem:[%s708_s6 + $0x78] sm:$0xff]  ;;  %v784_v31 = vld [vmem:[%s708_s6 + $0x68] sm:$0xff]  ;;  %v195_v33 = vmul.f32 %v775_v28, %v775_v28  ;;  %v193_v36 = vmul.f32 %v781_v30, %v781_v30  ;;  %v261_v60 = vld [vmem:[%s905_s1] sm:$0x3]  ;;  %p511_p12 = pnand %p510_p6, %p913_p11  ;;  %s513_s19 = sshll.u32 %s580_s17, 4  ;;  %s514_s19 = int_to_ptr.vmem [resolvable:$false] %s513_s19 }
  0x3e   : > { %198 = vadd.xlane.f32.xlu0 %v197_v21  ;;  %v200_v25 = vadd.f32 %v184_v17, %v183_v16  ;;  %v196_v34 = vmul.f32 %v778_v29, %v778_v29  ;;  %v209_v35 = vadd.f32 %v190_v27, %v189_v26  ;;  %v194_v37 = vmul.f32 %v784_v31, %v784_v31  ;;  %s515_s23 = scalar_lea.vmem %s514_s19, 4096  ;;  %p516_p8 = scmp.lt.s32.totalorder %s854_s4, %s514_s19 }
  0x3f   : > { %v212_v32 = vadd.f32 %v192_v24, %v191_v23  ;;  %v265_v57 = vsub.s32 0, %v264_v50  ;;  %v269_v58 = vsub.s32 1, %v264_v50  ;;  %p512_p13 = pneg %p511_p12  ;;  %p517_p10 = scmp.lt.s32.totalorder %s515_s23, %s509_s16 }
  0x40   : > { %v218_v38 = vadd.f32 %v196_v34, %v195_v33  ;;  %v215_v39 = vadd.f32 %v194_v37, %v193_v36 }
  0x41   : > { %207 = vadd.xlane.f32.xlu1 %v206_v22  ;;  %v797_v6 = vrot.slane %v261_v60, %v265_v57  ;;  %v799_v9 = vrot.slane %v261_v60, %v269_v58  ;;  %p518_p0 = por %p517_p10, %p516_p8 }
  0x42   : > { %201 = vadd.xlane.f32.xlu0 %v200_v25 }
  0x43   : > { %p519_p2 = pnand %p518_p0, %p512_p13 }
  0x45   : > { %213 = vadd.xlane.f32.xlu1 %v212_v32 }
  0x46   : > { %210 = vadd.xlane.f32.xlu0 %v209_v35 }
  0x49   : > { %219 = vadd.xlane.f32.xlu1 %v218_v38 }
  0x4a   : > { %216 = vadd.xlane.f32.xlu0 %v215_v39 }
  0xca   : > { %v205_v40 = vpop.xlane.xlu1 %204 }
  0xcb   : > { %v223_v41 = vmul.f32 0.00390625, %v205_v40  ;;  %v199_v42 = vpop.xlane.xlu0 %198 }
  0xcc   : > { %v221_v44 = vmul.f32 0.00390625, %v199_v42 }
  0xcd   : > { %v231_v45 = vadd.f32 1e-06, %v223_v41 }
  0xce   : > { %v229_v46 = vadd.f32 1e-06, %v221_v44  ;;  %v208_v47 = vpop.xlane.xlu1 %207 }
  0xcf   : > { %463 = vrsqrt.f32 %v231_v45  ;;  %v224_v48 = vmul.f32 0.00390625, %v208_v47  ;;  %v202_v49 = vpop.xlane.xlu0 %201 }
  0xd0   : > { %465 = vrsqrt.f32 %v229_v46  ;;  %v222_v51 = vmul.f32 0.00390625, %v202_v49 }
  0xd1   : > { %v232_v52 = vadd.f32 1e-06, %v224_v48 }
  0xd2   : > { %v230_v53 = vadd.f32 1e-06, %v222_v51  ;;  %v214_v54 = vpop.xlane.xlu1 %213 }
  0xd3   : > { %467 = vrsqrt.f32 %v232_v52  ;;  %v226_v55 = vmul.f32 0.00390625, %v214_v54  ;;  %v211_v56 = vpop.xlane.xlu0 %210 }
  0xd4   : > { %469 = vrsqrt.f32 %v230_v53  ;;  %v225_v59 = vmul.f32 0.00390625, %v211_v56 }
  0xd5   : > { %v234_v61 = vadd.f32 1e-06, %v226_v55 }
  0xd6   : > { %v233_v62 = vadd.f32 1e-06, %v225_v59  ;;  %v220_v63 = vpop.xlane.xlu1 %219 }
  0xd7   : > { %471 = vrsqrt.f32 %v234_v61  ;;  %v228_v3 = vmul.f32 0.00390625, %v220_v63  ;;  %v217_v4 = vpop.xlane.xlu0 %216 }
  0xd8   : > { %473 = vrsqrt.f32 %v233_v62  ;;  %v227_v10 = vmul.f32 0.00390625, %v217_v4 }
  0xd9   : > { %v464_v11 = vpop.eup %463  ;;  %v236_v15 = vadd.f32 1e-06, %v228_v3 }
  0xda   : > { %v466_v16 = vpop.eup %465  ;;  %v249_v17 = vmul.f32 %v464_v11, %v715_v0  ;;  %v250_v21 = vmul.f32 %v464_v11, %v718_v1  ;;  %v235_v22 = vadd.f32 1e-06, %v227_v10 }
  0xdb   : > { %v245_v23 = vmul.f32 %v466_v16, %v721_v2  ;;  %v246_v24 = vmul.f32 %v466_v16, %v728_v5  ;;  %475 = vrsqrt.f32 %v236_v15 }
  0xdc   : > { %v277_v25 = vmul.f32 %v797_v6, %v249_v17  ;;  %v278_v26 = vmul.f32 %v799_v9, %v250_v21  ;;  %477 = vrsqrt.f32 %v235_v22 }
  0xdd   : > { %v468_v27 = vpop.eup %467  ;;  %v273_v32 = vmul.f32 %v797_v6, %v245_v23  ;;  %v274_v33 = vmul.f32 %v799_v9, %v246_v24 }
  0xde   : > { %v470_v34 = vpop.eup %469  ;;  %293 = vst [vmem:[%s811_s30 + $0x20] sm:$0xff] %v277_v25  ;;  %294 = vst [vmem:[%s811_s30 + $0x28] sm:$0xff] %v278_v26  ;;  %v251_v0 = vmul.f32 %v468_v27, %v733_v7  ;;  %v252_v1 = vmul.f32 %v468_v27, %v736_v8 }
  0xdf   : > { %289 = vst [vmem:[%s811_s30] sm:$0xff] %v273_v32  ;;  %290 = vst [vmem:[%s811_s30 + $0x8] sm:$0xff] %v274_v33  ;;  %v247_v2 = vmul.f32 %v470_v34, %v745_v12  ;;  %v248_v5 = vmul.f32 %v470_v34, %v748_v13 }
  0xe0   : > { %v279_v35 = vmul.f32 %v797_v6, %v251_v0  ;;  %v280_v36 = vmul.f32 %v799_v9, %v252_v1 }
  0xe1   : > { %v472_v37 = vpop.eup %471  ;;  %v275_v38 = vmul.f32 %v797_v6, %v247_v2  ;;  %v276_v7 = vmul.f32 %v799_v9, %v248_v5 }
  0xe2   : > { %v474_v39 = vpop.eup %473  ;;  %295 = vst [vmem:[%s811_s30 + $0x30] sm:$0xff] %v279_v35  ;;  %296 = vst [vmem:[%s811_s30 + $0x38] sm:$0xff] %v280_v36  ;;  %v255_v8 = vmul.f32 %v472_v37, %v751_v14  ;;  %v256_v12 = vmul.f32 %v472_v37, %v758_v18 }
  0xe3   : > { %291 = vst [vmem:[%s811_s30 + $0x10] sm:$0xff] %v275_v38  ;;  %292 = vst [vmem:[%s811_s30 + $0x18] sm:$0xff] %v276_v7  ;;  %v253_v13 = vmul.f32 %v474_v39, %v761_v19  ;;  %v254_v40 = vmul.f32 %v474_v39, %v764_v20 }
  0xe4   : > { %v283_v41 = vmul.f32 %v797_v6, %v255_v8  ;;  %v284_v42 = vmul.f32 %v799_v9, %v256_v12 }
  0xe5   : > { %v476_v43 = vpop.eup %475  ;;  %v281_v44 = vmul.f32 %v797_v6, %v253_v13  ;;  %v282_v45 = vmul.f32 %v799_v9, %v254_v40 }
  0xe6   : > { %v478_v14 = vpop.eup %477  ;;  %299 = vst [vmem:[%s811_s30 + $0x50] sm:$0xff] %v283_v41  ;;  %300 = vst [vmem:[%s811_s30 + $0x58] sm:$0xff] %v284_v42  ;;  %v259_v18 = vmul.f32 %v476_v43, %v775_v28  ;;  %v260_v19 = vmul.f32 %v476_v43, %v778_v29 }
  0xe7   : > { %297 = vst [vmem:[%s811_s30 + $0x40] sm:$0xff] %v281_v44  ;;  %298 = vst [vmem:[%s811_s30 + $0x48] sm:$0xff] %v282_v45  ;;  %v257_v20 = vmul.f32 %v478_v14, %v781_v30  ;;  %v258_v46 = vmul.f32 %v478_v14, %v784_v31 }
  0xe8   : > { %v287_v47 = vmul.f32 %v797_v6, %v259_v18  ;;  %v288_v48 = vmul.f32 %v799_v9, %v260_v19 }
  0xe9   : > { %v285_v28 = vmul.f32 %v797_v6, %v257_v20  ;;  %v286_v29 = vmul.f32 %v799_v9, %v258_v46 }
  0xea   : > { %303 = vst [vmem:[%s811_s30 + $0x70] sm:$0xff] %v287_v47  ;;  %304 = vst [vmem:[%s811_s30 + $0x78] sm:$0xff] %v288_v48 }
  0xeb   : > { %301 = vst [vmem:[%s811_s30 + $0x60] sm:$0xff] %v285_v28  ;;  %302 = vst [vmem:[%s811_s30 + $0x68] sm:$0xff] %v286_v29 }
  0xec   : > { %522 = shalt.err (!%p519_p2)
}
  0xed   : > { %s523_s24 = scalar_lea.hbm %s852_s8, 2048  ;;  %s527_s29 = scalar_lea.hbm %s906_s2, 4096 }
  0xee   : > { %p524_p4 = scmp.ne.s32.totalorder %s852_s8, %s523_s24  ;;  %p528_p9 = scmp.lt.u32.totalorder %s852_s8, %s906_s2 }
  0xef   : > { %p529_p1 = scmp.lt.u32.totalorder %s527_s29, %s523_s24  ;;  %p531_p6 = scmp.lt.u32.totalorder %s523_s24, %s852_s8 }
  0xf0   : > { %p525_p5 = pnand %p524_p4, %p913_p11 }
  0xf1   : > { %p530_p3 = por %p529_p1, %p528_p9 }
  0xf2   : > { %p526_p7 = pneg %p525_p5 }
  0xf3   : > { %p532_p12 = por %p531_p6, %p530_p3 }
  0xf5   : > { %p533_p13 = pnand %p532_p12, %p526_p7 }
  0xf7   : > { %536 = shalt.err (!%p533_p13)
}
  0xf8   : > { %s581_s20 = smov 256   ;;  %s582_s28 = smov 16  }
  0xf9   : > { %415 = dma.vmem_to_hbm [thread:$0]  (%p913_p11), %s854_s4, 2048, %s852_s8, %s306_s14, %s581_s20, %s581_s20, %s582_s28  }
  0xfa PF: > { %s335_s30 = sand.u32 1, %s563_s9   ;;  %p914_p8 = scmp.ne.s32.totalorder %s911_s22, 0 }
  0xfb   : > { %p915_p10 = scmp.ge.s32.totalorder %s575_s12, 2  ;;  %s336_s3 = scalar_lea.sflag [#allocation4], %s335_s30 }
  0xfd   : > { %p422_p0 = pnand %p915_p10, %p914_p8 }
  0xff   : > { %558 = dma.done.wait (!%p422_p0), %s336_s3, 2048  }
 0x100   : > { %560 = vsyncadd (!%p422_p0), %s336_s3, 4294965248  ;;  %p15_p2 = scmp.ge.s32.totalorder %s623_s15, 4   ;;  %s916_s9 = smov %s567_s10 }
 0x101   : > { %s917_s10 = smov %s571_s11  ;;  %s918_s11 = smov %s635_s18 }
 0x102   : > { %s919_s12 = smov %s623_s15  ;;  %17 = sbr.rel (!%p15_p2) target bundleno = 5 (0x5), region = 73 }
 0x109   :  { %341 = vsyncpa [#allocation3], 1 }
 0x10a   :  { %343 = vsyncpa [#allocation3 + $0x1], 1 }
 0x10b   :  { %344 = vsyncpa [#allocation4], 1 }
 0x10c   :  { %346 = vsyncpa [#allocation4 + $0x1], 1 }

</bundles_post_ra>
